<compile_context>
chip_gen: v5e
topology: v5e:2x2
jax: 0.10.0
libtpu: 0.0.40
codegen_flags: <defaults>
</compile_context>

<pallas_src>
import functools

import jax
import jax.numpy as jnp
from jax import lax
from jax.experimental import pallas as pl
from jax.experimental.pallas import tpu as pltpu


def _encoder_layer_kernel(n_heads, eps,
                          x_ref, mask_ref,
                          wqkv_ref, bqkv_ref, wo_ref, bo_ref,
                          g1_ref, be1_ref,
                          w1_ref, b1_ref, w2_ref, b2_ref,
                          g2_ref, be2_ref,
                          out_ref):
    # x_ref block: (S, D) -- batch dim squeezed by the BlockSpec
    x = x_ref[...]                       # (S, D), f32
    mask = mask_ref[...]                 # (S, S), additive mask

    S, D = x.shape
    dh = D // n_heads
    scale = 1.0 / (dh ** 0.5)

    x_bf = x.astype(jnp.bfloat16)

    # ---- fused QKV projection: one bf16 MXU matmul, f32 accumulation ----
    qkv = jnp.dot(x_bf, wqkv_ref[...],
                  preferred_element_type=jnp.float32) + bqkv_ref[...]
    q = qkv[:, 0 * D:1 * D] * scale      # fold 1/sqrt(dh) into Q (cheaper)
    k = qkv[:, 1 * D:2 * D]
    v = qkv[:, 2 * D:3 * D]
    q_bf = q.astype(jnp.bfloat16)
    k_bf = k.astype(jnp.bfloat16)
    v_bf = v.astype(jnp.bfloat16)

    # ---- multi-head self-attention (static unrolled head loop) ---------
    # dot_general contracts the dh axis of both operands directly: no kh.T,
    # so no XLU transpose / materialized copy per head.
    dn = (((1,), (1,)), ((), ()))
    head_outs = []
    for h in range(n_heads):             # n_heads is small & static
        qh = q_bf[:, h * dh:(h + 1) * dh]          # (S, dh)
        kh = k_bf[:, h * dh:(h + 1) * dh]
        vh = v_bf[:, h * dh:(h + 1) * dh]
        s = lax.dot_general(qh, kh, dimension_numbers=dn,
                            preferred_element_type=jnp.float32)   # (S, S)
        s = s + mask
        s = s - jnp.max(s, axis=-1, keepdims=True)
        p = jnp.exp(s)
        p = p * pl.reciprocal(jnp.sum(p, axis=-1, keepdims=True), approx=True)
        head_outs.append(jnp.dot(p.astype(jnp.bfloat16), vh,
                                 preferred_element_type=jnp.float32))
    attn = jnp.concatenate(head_outs, axis=-1)      # (S, D), f32
    attn_out = jnp.dot(attn.astype(jnp.bfloat16), wo_ref[...],
                       preferred_element_type=jnp.float32) + bo_ref[...]

    # ---- residual + LayerNorm 1 (dropout = identity in eval) -----------
    h1 = x + attn_out
    mu1 = jnp.mean(h1, axis=-1, keepdims=True)
    var1 = jnp.mean((h1 - mu1) ** 2, axis=-1, keepdims=True)
    h1n = (h1 - mu1) * lax.rsqrt(var1 + eps) * g1_ref[...] + be1_ref[...]

    # ---- position-wise FFN (bf16 matmuls, f32 accumulation) ------------
    f = jnp.dot(h1n.astype(jnp.bfloat16), w1_ref[...],
                preferred_element_type=jnp.float32) + b1_ref[...]
    f = jnp.maximum(f, 0.0)                          # ReLU
    ff = jnp.dot(f.astype(jnp.bfloat16), w2_ref[...],
                 preferred_element_type=jnp.float32) + b2_ref[...]

    # ---- residual + LayerNorm 2 -----------------------------------------
    h2 = h1n + ff
    mu2 = jnp.mean(h2, axis=-1, keepdims=True)
    var2 = jnp.mean((h2 - mu2) ** 2, axis=-1, keepdims=True)
    out = (h2 - mu2) * lax.rsqrt(var2 + eps) * g2_ref[...] + be2_ref[...]

    out_ref[...] = out.astype(out_ref.dtype)


def transformer_encoder_layer(x, mask, params, *, n_heads, eps=1e-5):
    """x: (B, S, D) f32, mask: (S, S) additive f32."""
    B, S, D = x.shape
    F = params["w1"].shape[1]

    full = lambda shape: pl.BlockSpec(shape, lambda b: (0,) * len(shape))

    in_specs = [
        pl.BlockSpec((None, S, D), lambda b: (b, 0, 0)),   # x (batch squeezed)
        full((S, S)),                                      # mask
        full((D, 3 * D)), full((1, 3 * D)),                # fused Wqkv, bqkv
        full((D, D)), full((1, D)),                        # Wo, bo
        full((1, D)), full((1, D)),                        # ln1 gamma, beta
        full((D, F)), full((1, F)),                        # fc1 W, b
        full((F, D)), full((1, D)),                        # fc2 W, b
        full((1, D)), full((1, D)),                        # ln2 gamma, beta
    ]

    # VMEM budget: bf16 weights + f32 small params + activation slabs,
    # x2 for BlockSpec double-buffering, clamped below v7x's 64 MiB VMEM.
    w_bytes = 2 * (D * 3 * D + D * D + D * F + F * D)          # bf16 weights
    p_bytes = 4 * (3 * D + 6 * D + F)                          # f32 bias/LN
    a_bytes = 4 * (2 * S * D + S * S + S * F + n_heads * S * S)
    vmem_limit = int(min(max(2 * (w_bytes + p_bytes + a_bytes) + (8 << 20),
                             16 << 20), 56 << 20))

    kernel = functools.partial(_encoder_layer_kernel, n_heads, eps)

    return pl.pallas_call(
        kernel,
        out_shape=jax.ShapeDtypeStruct((B, S, D), x.dtype),
        grid_spec=pltpu.PrefetchScalarGridSpec(
            num_scalar_prefetch=0,
            grid=(B,),
            in_specs=in_specs,
            out_specs=pl.BlockSpec((None, S, D), lambda b: (b, 0, 0)),
        ),
        compiler_params=pltpu.CompilerParams(
            dimension_semantics=("parallel",),
            vmem_limit_bytes=vmem_limit),
    )(x, mask,
      params["wqkv"], params["bqkv"], params["wo"], params["bo"],
      params["g1"], params["be1"],
      params["w1"], params["b1"], params["w2"], params["b2"],
      params["g2"], params["be2"])


def init_params(key, d_model, d_ff):
    ks = jax.random.split(key, 6)
    sd = 0.02
    wq = jax.random.normal(ks[0], (d_model, d_model), jnp.float32) * sd
    wk = jax.random.normal(ks[1], (d_model, d_model), jnp.float32) * sd
    wv = jax.random.normal(ks[2], (d_model, d_model), jnp.float32) * sd
    wo = jax.random.normal(ks[3], (d_model, d_model), jnp.float32) * sd
    w1 = jax.random.normal(ks[4], (d_model, d_ff), jnp.float32) * sd
    w2 = jax.random.normal(ks[5], (d_ff, d_model), jnp.float32) * sd
    return {
        # weights stored bf16: half the HBM/VMEM bytes, native MXU dtype
        "wqkv": jnp.concatenate([wq, wk, wv], axis=1).astype(jnp.bfloat16),
        "bqkv": jnp.zeros((1, 3 * d_model), jnp.float32),
        "wo": wo.astype(jnp.bfloat16),
        "bo": jnp.zeros((1, d_model), jnp.float32),
        "w1": w1.astype(jnp.bfloat16),
        "b1": jnp.zeros((1, d_ff), jnp.float32),
        "w2": w2.astype(jnp.bfloat16),
        "b2": jnp.zeros((1, d_model), jnp.float32),
        "g1": jnp.ones((1, d_model), jnp.float32),
        "be1": jnp.zeros((1, d_model), jnp.float32),
        "g2": jnp.ones((1, d_model), jnp.float32),
        "be2": jnp.zeros((1, d_model), jnp.float32),
    }


def _reference(x, mask, p, n_heads, eps=1e-5):
    """Pure-JAX f32 reference (weights de-quantized from bf16 storage)."""
    B, S, D = x.shape
    dh = D // n_heads
    wqkv = p["wqkv"].astype(jnp.float32)
    wq, wk, wv = wqkv[:, :D], wqkv[:, D:2 * D], wqkv[:, 2 * D:]
    bqkv = p["bqkv"]
    q = x @ wq + bqkv[:, :D]
    k = x @ wk + bqkv[:, D:2 * D]
    v = x @ wv + bqkv[:, 2 * D:]
    q = q.reshape(B, S, n_heads, dh).transpose(0, 2, 1, 3)
    k = k.reshape(B, S, n_heads, dh).transpose(0, 2, 1, 3)
    v = v.reshape(B, S, n_heads, dh).transpose(0, 2, 1, 3)
    s = jnp.einsum("bhqd,bhkd->bhqk", q, k) / (dh ** 0.5) + mask
    pattn = jax.nn.softmax(s, axis=-1)
    a = jnp.einsum("bhqk,bhkd->bhqd", pattn, v)
    a = a.transpose(0, 2, 1, 3).reshape(B, S, D)
    a = a @ p["wo"].astype(jnp.float32) + p["bo"]

    def ln(y, g, b):
        mu = jnp.mean(y, axis=-1, keepdims=True)
        var = jnp.mean((y - mu) ** 2, axis=-1, keepdims=True)
        return (y - mu) / jnp.sqrt(var + eps) * g + b

    h1 = ln(x + a, p["g1"], p["be1"])
    ff = jnp.maximum(h1 @ p["w1"].astype(jnp.float32) + p["b1"], 0.0) \
         @ p["w2"].astype(jnp.float32) + p["b2"]
    return ln(h1 + ff, p["g2"], p["be2"])


if __name__ == "__main__":
    B, S, D, H, F = 2, 8, 32, 4, 64
    key = jax.random.PRNGKey(0)
    kx, kp = jax.random.split(key)
    x = jax.random.normal(kx, (B, S, D), jnp.float32)
    # Additive causal-style mask: 0 on/below diag, -1e9 above.
    mask = jnp.where(jnp.tril(jnp.ones((S, S), jnp.bool_)),
                     0.0, -1e9).astype(jnp.float32)
    params = init_params(kp, D, F)

    out = transformer_encoder_layer(x, mask, params, n_heads=H)
    out = jax.block_until_ready(out)

    ref = _reference(x, mask, params, H)
    err = jnp.max(jnp.abs(out - ref))
    # bf16 matmul inputs + approx reciprocal -> slightly loosened tolerance
    assert jnp.allclose(out, ref, atol=2e-2, rtol=2e-2), f"max abs err {err}"
    print("KERNEL_OK")
</pallas_src>

<mosaic_0001>
module attributes {stable_mosaic.version = 11 : i64} {
  func.func @_encoder_layer_kernel(%arg0: i32, %arg1: memref<1x8x32xf32, #tpu.memory_space<vmem>>, %arg2: memref<8x8xf32, #tpu.memory_space<vmem>>, %arg3: memref<32x96xbf16, #tpu.memory_space<vmem>>, %arg4: memref<1x96xf32, #tpu.memory_space<vmem>>, %arg5: memref<32x32xbf16, #tpu.memory_space<vmem>>, %arg6: memref<1x32xf32, #tpu.memory_space<vmem>>, %arg7: memref<1x32xf32, #tpu.memory_space<vmem>>, %arg8: memref<1x32xf32, #tpu.memory_space<vmem>>, %arg9: memref<32x64xbf16, #tpu.memory_space<vmem>>, %arg10: memref<1x64xf32, #tpu.memory_space<vmem>>, %arg11: memref<64x32xbf16, #tpu.memory_space<vmem>>, %arg12: memref<1x32xf32, #tpu.memory_space<vmem>>, %arg13: memref<1x32xf32, #tpu.memory_space<vmem>>, %arg14: memref<1x32xf32, #tpu.memory_space<vmem>>, %arg15: memref<1x8x32xf32, #tpu.memory_space<vmem>>) attributes {dimension_semantics = [#tpu.dimension_semantics<parallel>], iteration_bounds = array<i64: 2>, scalar_prefetch = 0 : i64, scratch_operands = 0 : i64, tpu.core_type = #tpu.core_type<tc>, window_params = [{transform_indices = @transform_0, window_bounds = array<i64: 1, 8, 32>}, {pipeline_mode = #tpu.pipeline_mode<synchronous>, transform_indices = @transform_1, window_bounds = array<i64: 8, 8>}, {pipeline_mode = #tpu.pipeline_mode<synchronous>, transform_indices = @transform_2, window_bounds = array<i64: 32, 96>}, {pipeline_mode = #tpu.pipeline_mode<synchronous>, transform_indices = @transform_3, window_bounds = array<i64: 1, 96>}, {pipeline_mode = #tpu.pipeline_mode<synchronous>, transform_indices = @transform_4, window_bounds = array<i64: 32, 32>}, {pipeline_mode = #tpu.pipeline_mode<synchronous>, transform_indices = @transform_5, window_bounds = array<i64: 1, 32>}, {pipeline_mode = #tpu.pipeline_mode<synchronous>, transform_indices = @transform_6, window_bounds = array<i64: 1, 32>}, {pipeline_mode = #tpu.pipeline_mode<synchronous>, transform_indices = @transform_7, window_bounds = array<i64: 1, 32>}, {pipeline_mode = #tpu.pipeline_mode<synchronous>, transform_indices = @transform_8, window_bounds = array<i64: 32, 64>}, {pipeline_mode = #tpu.pipeline_mode<synchronous>, transform_indices = @transform_9, window_bounds = array<i64: 1, 64>}, {pipeline_mode = #tpu.pipeline_mode<synchronous>, transform_indices = @transform_10, window_bounds = array<i64: 64, 32>}, {pipeline_mode = #tpu.pipeline_mode<synchronous>, transform_indices = @transform_11, window_bounds = array<i64: 1, 32>}, {pipeline_mode = #tpu.pipeline_mode<synchronous>, transform_indices = @transform_12, window_bounds = array<i64: 1, 32>}, {pipeline_mode = #tpu.pipeline_mode<synchronous>, transform_indices = @transform_13, window_bounds = array<i64: 1, 32>}, {transform_indices = @transform_14, window_bounds = array<i64: 1, 8, 32>}]} {
    %c0 = arith.constant 0 : index
    %c0_0 = arith.constant 0 : index
    %c0_1 = arith.constant 0 : index
    %0 = vector.load %arg1[%c0, %c0_0, %c0_1] : memref<1x8x32xf32, #tpu.memory_space<vmem>>, vector<1x8x32xf32>
    %1 = vector.shape_cast %0 : vector<1x8x32xf32> to vector<8x32xf32>
    %c0_2 = arith.constant 0 : index
    %c0_3 = arith.constant 0 : index
    %2 = vector.load %arg2[%c0_2, %c0_3] : memref<8x8xf32, #tpu.memory_space<vmem>>, vector<8x8xf32>
    %3 = arith.truncf %1 : vector<8x32xf32> to vector<8x32xbf16>
    %c0_4 = arith.constant 0 : index
    %c0_5 = arith.constant 0 : index
    %4 = vector.load %arg3[%c0_4, %c0_5] : memref<32x96xbf16, #tpu.memory_space<vmem>>, vector<32x96xbf16>
    %cst = arith.constant dense<0.000000e+00> : vector<8x96xf32>
    %5 = tpu.matmul %3, %4, %cst {dimension_numbers = #tpu.dot_dimension_numbers<[1], [0], [0], [1], [0, 0, 1, 1], [], []>} : vector<8x32xbf16>, vector<32x96xbf16>, vector<8x96xf32> -> vector<8x96xf32>
    %c0_6 = arith.constant 0 : index
    %c0_7 = arith.constant 0 : index
    %6 = vector.load %arg4[%c0_6, %c0_7] : memref<1x96xf32, #tpu.memory_space<vmem>>, vector<1x96xf32>
    %7 = vector.broadcast %6 : vector<1x96xf32> to vector<8x96xf32>
    %8 = arith.addf %5, %7 : vector<8x96xf32>
    %9 = vector.extract_strided_slice %8 {offsets = [0, 0], sizes = [8, 32], strides = [1, 1]} : vector<8x96xf32> to vector<8x32xf32>
    %cst_8 = arith.constant 0.353553385 : f32
    %10 = vector.broadcast %cst_8 : f32 to vector<8x32xf32>
    %11 = arith.mulf %9, %10 : vector<8x32xf32>
    %12 = vector.extract_strided_slice %8 {offsets = [0, 32], sizes = [8, 32], strides = [1, 1]} : vector<8x96xf32> to vector<8x32xf32>
    %13 = vector.extract_strided_slice %8 {offsets = [0, 64], sizes = [8, 32], strides = [1, 1]} : vector<8x96xf32> to vector<8x32xf32>
    %14 = arith.truncf %11 : vector<8x32xf32> to vector<8x32xbf16>
    %15 = arith.truncf %12 : vector<8x32xf32> to vector<8x32xbf16>
    %16 = arith.truncf %13 : vector<8x32xf32> to vector<8x32xbf16>
    %17 = vector.extract_strided_slice %14 {offsets = [0, 0], sizes = [8, 8], strides = [1, 1]} : vector<8x32xbf16> to vector<8x8xbf16>
    %18 = vector.extract_strided_slice %15 {offsets = [0, 0], sizes = [8, 8], strides = [1, 1]} : vector<8x32xbf16> to vector<8x8xbf16>
    %19 = vector.extract_strided_slice %16 {offsets = [0, 0], sizes = [8, 8], strides = [1, 1]} : vector<8x32xbf16> to vector<8x8xbf16>
    %cst_9 = arith.constant dense<0.000000e+00> : vector<8x8xf32>
    %20 = tpu.matmul %17, %18, %cst_9 {dimension_numbers = #tpu.dot_dimension_numbers<[1], [1], [0], [0], [0, 0, 1, 0], [], []>} : vector<8x8xbf16>, vector<8x8xbf16>, vector<8x8xf32> -> vector<8x8xf32>
    %21 = arith.addf %20, %2 : vector<8x8xf32>
    %cst_10 = arith.constant dense<0xFF800000> : vector<8xf32>
    %22 = vector.multi_reduction <maximumf>, %21, %cst_10 [1] : vector<8x8xf32> to vector<8xf32>
    %23 = vector.shape_cast %22 : vector<8xf32> to vector<8x1xf32>
    %24 = vector.broadcast %23 : vector<8x1xf32> to vector<8x8xf32>
    %25 = arith.subf %21, %24 : vector<8x8xf32>
    %26 = math.exp %25 : vector<8x8xf32>
    %cst_11 = arith.constant dense<0.000000e+00> : vector<8xf32>
    %27 = vector.multi_reduction <add>, %26, %cst_11 [1] : vector<8x8xf32> to vector<8xf32>
    %28 = vector.shape_cast %27 : vector<8xf32> to vector<8x1xf32>
    %29 = tpu.reciprocal %28 {approx = true} : vector<8x1xf32> -> vector<8x1xf32>
    %30 = vector.broadcast %29 : vector<8x1xf32> to vector<8x8xf32>
    %31 = arith.mulf %26, %30 : vector<8x8xf32>
    %32 = arith.truncf %31 : vector<8x8xf32> to vector<8x8xbf16>
    %cst_12 = arith.constant dense<0.000000e+00> : vector<8x8xf32>
    %33 = tpu.matmul %32, %19, %cst_12 {dimension_numbers = #tpu.dot_dimension_numbers<[1], [0], [0], [1], [0, 0, 1, 1], [], []>} : vector<8x8xbf16>, vector<8x8xbf16>, vector<8x8xf32> -> vector<8x8xf32>
    %34 = vector.extract_strided_slice %14 {offsets = [0, 8], sizes = [8, 8], strides = [1, 1]} : vector<8x32xbf16> to vector<8x8xbf16>
    %35 = vector.extract_strided_slice %15 {offsets = [0, 8], sizes = [8, 8], strides = [1, 1]} : vector<8x32xbf16> to vector<8x8xbf16>
    %36 = vector.extract_strided_slice %16 {offsets = [0, 8], sizes = [8, 8], strides = [1, 1]} : vector<8x32xbf16> to vector<8x8xbf16>
    %cst_13 = arith.constant dense<0.000000e+00> : vector<8x8xf32>
    %37 = tpu.matmul %34, %35, %cst_13 {dimension_numbers = #tpu.dot_dimension_numbers<[1], [1], [0], [0], [0, 0, 1, 0], [], []>} : vector<8x8xbf16>, vector<8x8xbf16>, vector<8x8xf32> -> vector<8x8xf32>
    %38 = arith.addf %37, %2 : vector<8x8xf32>
    %cst_14 = arith.constant dense<0xFF800000> : vector<8xf32>
    %39 = vector.multi_reduction <maximumf>, %38, %cst_14 [1] : vector<8x8xf32> to vector<8xf32>
    %40 = vector.shape_cast %39 : vector<8xf32> to vector<8x1xf32>
    %41 = vector.broadcast %40 : vector<8x1xf32> to vector<8x8xf32>
    %42 = arith.subf %38, %41 : vector<8x8xf32>
    %43 = math.exp %42 : vector<8x8xf32>
    %cst_15 = arith.constant dense<0.000000e+00> : vector<8xf32>
    %44 = vector.multi_reduction <add>, %43, %cst_15 [1] : vector<8x8xf32> to vector<8xf32>
    %45 = vector.shape_cast %44 : vector<8xf32> to vector<8x1xf32>
    %46 = tpu.reciprocal %45 {approx = true} : vector<8x1xf32> -> vector<8x1xf32>
    %47 = vector.broadcast %46 : vector<8x1xf32> to vector<8x8xf32>
    %48 = arith.mulf %43, %47 : vector<8x8xf32>
    %49 = arith.truncf %48 : vector<8x8xf32> to vector<8x8xbf16>
    %cst_16 = arith.constant dense<0.000000e+00> : vector<8x8xf32>
    %50 = tpu.matmul %49, %36, %cst_16 {dimension_numbers = #tpu.dot_dimension_numbers<[1], [0], [0], [1], [0, 0, 1, 1], [], []>} : vector<8x8xbf16>, vector<8x8xbf16>, vector<8x8xf32> -> vector<8x8xf32>
    %51 = vector.extract_strided_slice %14 {offsets = [0, 16], sizes = [8, 8], strides = [1, 1]} : vector<8x32xbf16> to vector<8x8xbf16>
    %52 = vector.extract_strided_slice %15 {offsets = [0, 16], sizes = [8, 8], strides = [1, 1]} : vector<8x32xbf16> to vector<8x8xbf16>
    %53 = vector.extract_strided_slice %16 {offsets = [0, 16], sizes = [8, 8], strides = [1, 1]} : vector<8x32xbf16> to vector<8x8xbf16>
    %cst_17 = arith.constant dense<0.000000e+00> : vector<8x8xf32>
    %54 = tpu.matmul %51, %52, %cst_17 {dimension_numbers = #tpu.dot_dimension_numbers<[1], [1], [0], [0], [0, 0, 1, 0], [], []>} : vector<8x8xbf16>, vector<8x8xbf16>, vector<8x8xf32> -> vector<8x8xf32>
    %55 = arith.addf %54, %2 : vector<8x8xf32>
    %cst_18 = arith.constant dense<0xFF800000> : vector<8xf32>
    %56 = vector.multi_reduction <maximumf>, %55, %cst_18 [1] : vector<8x8xf32> to vector<8xf32>
    %57 = vector.shape_cast %56 : vector<8xf32> to vector<8x1xf32>
    %58 = vector.broadcast %57 : vector<8x1xf32> to vector<8x8xf32>
    %59 = arith.subf %55, %58 : vector<8x8xf32>
    %60 = math.exp %59 : vector<8x8xf32>
    %cst_19 = arith.constant dense<0.000000e+00> : vector<8xf32>
    %61 = vector.multi_reduction <add>, %60, %cst_19 [1] : vector<8x8xf32> to vector<8xf32>
    %62 = vector.shape_cast %61 : vector<8xf32> to vector<8x1xf32>
    %63 = tpu.reciprocal %62 {approx = true} : vector<8x1xf32> -> vector<8x1xf32>
    %64 = vector.broadcast %63 : vector<8x1xf32> to vector<8x8xf32>
    %65 = arith.mulf %60, %64 : vector<8x8xf32>
    %66 = arith.truncf %65 : vector<8x8xf32> to vector<8x8xbf16>
    %cst_20 = arith.constant dense<0.000000e+00> : vector<8x8xf32>
    %67 = tpu.matmul %66, %53, %cst_20 {dimension_numbers = #tpu.dot_dimension_numbers<[1], [0], [0], [1], [0, 0, 1, 1], [], []>} : vector<8x8xbf16>, vector<8x8xbf16>, vector<8x8xf32> -> vector<8x8xf32>
    %68 = vector.extract_strided_slice %14 {offsets = [0, 24], sizes = [8, 8], strides = [1, 1]} : vector<8x32xbf16> to vector<8x8xbf16>
    %69 = vector.extract_strided_slice %15 {offsets = [0, 24], sizes = [8, 8], strides = [1, 1]} : vector<8x32xbf16> to vector<8x8xbf16>
    %70 = vector.extract_strided_slice %16 {offsets = [0, 24], sizes = [8, 8], strides = [1, 1]} : vector<8x32xbf16> to vector<8x8xbf16>
    %cst_21 = arith.constant dense<0.000000e+00> : vector<8x8xf32>
    %71 = tpu.matmul %68, %69, %cst_21 {dimension_numbers = #tpu.dot_dimension_numbers<[1], [1], [0], [0], [0, 0, 1, 0], [], []>} : vector<8x8xbf16>, vector<8x8xbf16>, vector<8x8xf32> -> vector<8x8xf32>
    %72 = arith.addf %71, %2 : vector<8x8xf32>
    %cst_22 = arith.constant dense<0xFF800000> : vector<8xf32>
    %73 = vector.multi_reduction <maximumf>, %72, %cst_22 [1] : vector<8x8xf32> to vector<8xf32>
    %74 = vector.shape_cast %73 : vector<8xf32> to vector<8x1xf32>
    %75 = vector.broadcast %74 : vector<8x1xf32> to vector<8x8xf32>
    %76 = arith.subf %72, %75 : vector<8x8xf32>
    %77 = math.exp %76 : vector<8x8xf32>
    %cst_23 = arith.constant dense<0.000000e+00> : vector<8xf32>
    %78 = vector.multi_reduction <add>, %77, %cst_23 [1] : vector<8x8xf32> to vector<8xf32>
    %79 = vector.shape_cast %78 : vector<8xf32> to vector<8x1xf32>
    %80 = tpu.reciprocal %79 {approx = true} : vector<8x1xf32> -> vector<8x1xf32>
    %81 = vector.broadcast %80 : vector<8x1xf32> to vector<8x8xf32>
    %82 = arith.mulf %77, %81 : vector<8x8xf32>
    %83 = arith.truncf %82 : vector<8x8xf32> to vector<8x8xbf16>
    %cst_24 = arith.constant dense<0.000000e+00> : vector<8x8xf32>
    %84 = tpu.matmul %83, %70, %cst_24 {dimension_numbers = #tpu.dot_dimension_numbers<[1], [0], [0], [1], [0, 0, 1, 1], [], []>} : vector<8x8xbf16>, vector<8x8xbf16>, vector<8x8xf32> -> vector<8x8xf32>
    %85 = tpu.concatenate %33, %50, %67, %84 in 1 : vector<8x8xf32>, vector<8x8xf32>, vector<8x8xf32>, vector<8x8xf32> -> vector<8x32xf32>
    %86 = arith.truncf %85 : vector<8x32xf32> to vector<8x32xbf16>
    %c0_25 = arith.constant 0 : index
    %c0_26 = arith.constant 0 : index
    %87 = vector.load %arg5[%c0_25, %c0_26] : memref<32x32xbf16, #tpu.memory_space<vmem>>, vector<32x32xbf16>
    %cst_27 = arith.constant dense<0.000000e+00> : vector<8x32xf32>
    %88 = tpu.matmul %86, %87, %cst_27 {dimension_numbers = #tpu.dot_dimension_numbers<[1], [0], [0], [1], [0, 0, 1, 1], [], []>} : vector<8x32xbf16>, vector<32x32xbf16>, vector<8x32xf32> -> vector<8x32xf32>
    %c0_28 = arith.constant 0 : index
    %c0_29 = arith.constant 0 : index
    %89 = vector.load %arg6[%c0_28, %c0_29] : memref<1x32xf32, #tpu.memory_space<vmem>>, vector<1x32xf32>
    %90 = vector.broadcast %89 : vector<1x32xf32> to vector<8x32xf32>
    %91 = arith.addf %88, %90 : vector<8x32xf32>
    %92 = arith.addf %1, %91 : vector<8x32xf32>
    %cst_30 = arith.constant dense<0.000000e+00> : vector<8xf32>
    %93 = vector.multi_reduction <add>, %92, %cst_30 [1] : vector<8x32xf32> to vector<8xf32>
    %94 = vector.shape_cast %93 : vector<8xf32> to vector<8x1xf32>
    %cst_31 = arith.constant 3.200000e+01 : f32
    %95 = vector.broadcast %cst_31 : f32 to vector<8x1xf32>
    %96 = arith.divf %94, %95 : vector<8x1xf32>
    %97 = vector.broadcast %96 : vector<8x1xf32> to vector<8x32xf32>
    %98 = arith.subf %92, %97 : vector<8x32xf32>
    %99 = arith.mulf %98, %98 : vector<8x32xf32>
    %cst_32 = arith.constant dense<0.000000e+00> : vector<8xf32>
    %100 = vector.multi_reduction <add>, %99, %cst_32 [1] : vector<8x32xf32> to vector<8xf32>
    %101 = vector.shape_cast %100 : vector<8xf32> to vector<8x1xf32>
    %cst_33 = arith.constant 3.200000e+01 : f32
    %102 = vector.broadcast %cst_33 : f32 to vector<8x1xf32>
    %103 = arith.divf %101, %102 : vector<8x1xf32>
    %104 = vector.broadcast %96 : vector<8x1xf32> to vector<8x32xf32>
    %105 = arith.subf %92, %104 : vector<8x32xf32>
    %cst_34 = arith.constant 9.99999974E-6 : f32
    %106 = vector.broadcast %cst_34 : f32 to vector<8x1xf32>
    %107 = arith.addf %103, %106 : vector<8x1xf32>
    %108 = math.rsqrt %107 : vector<8x1xf32>
    %109 = vector.broadcast %108 : vector<8x1xf32> to vector<8x32xf32>
    %110 = arith.mulf %105, %109 : vector<8x32xf32>
    %c0_35 = arith.constant 0 : index
    %c0_36 = arith.constant 0 : index
    %111 = vector.load %arg7[%c0_35, %c0_36] : memref<1x32xf32, #tpu.memory_space<vmem>>, vector<1x32xf32>
    %112 = vector.broadcast %111 : vector<1x32xf32> to vector<8x32xf32>
    %113 = arith.mulf %110, %112 : vector<8x32xf32>
    %c0_37 = arith.constant 0 : index
    %c0_38 = arith.constant 0 : index
    %114 = vector.load %arg8[%c0_37, %c0_38] : memref<1x32xf32, #tpu.memory_space<vmem>>, vector<1x32xf32>
    %115 = vector.broadcast %114 : vector<1x32xf32> to vector<8x32xf32>
    %116 = arith.addf %113, %115 : vector<8x32xf32>
    %117 = arith.truncf %116 : vector<8x32xf32> to vector<8x32xbf16>
    %c0_39 = arith.constant 0 : index
    %c0_40 = arith.constant 0 : index
    %118 = vector.load %arg9[%c0_39, %c0_40] : memref<32x64xbf16, #tpu.memory_space<vmem>>, vector<32x64xbf16>
    %cst_41 = arith.constant dense<0.000000e+00> : vector<8x64xf32>
    %119 = tpu.matmul %117, %118, %cst_41 {dimension_numbers = #tpu.dot_dimension_numbers<[1], [0], [0], [1], [0, 0, 1, 1], [], []>} : vector<8x32xbf16>, vector<32x64xbf16>, vector<8x64xf32> -> vector<8x64xf32>
    %c0_42 = arith.constant 0 : index
    %c0_43 = arith.constant 0 : index
    %120 = vector.load %arg10[%c0_42, %c0_43] : memref<1x64xf32, #tpu.memory_space<vmem>>, vector<1x64xf32>
    %121 = vector.broadcast %120 : vector<1x64xf32> to vector<8x64xf32>
    %122 = arith.addf %119, %121 : vector<8x64xf32>
    %cst_44 = arith.constant 0.000000e+00 : f32
    %123 = vector.broadcast %cst_44 : f32 to vector<8x64xf32>
    %124 = arith.maximumf %122, %123 : vector<8x64xf32>
    %125 = arith.truncf %124 : vector<8x64xf32> to vector<8x64xbf16>
    %c0_45 = arith.constant 0 : index
    %c0_46 = arith.constant 0 : index
    %126 = vector.load %arg11[%c0_45, %c0_46] : memref<64x32xbf16, #tpu.memory_space<vmem>>, vector<64x32xbf16>
    %cst_47 = arith.constant dense<0.000000e+00> : vector<8x32xf32>
    %127 = tpu.matmul %125, %126, %cst_47 {dimension_numbers = #tpu.dot_dimension_numbers<[1], [0], [0], [1], [0, 0, 1, 1], [], []>} : vector<8x64xbf16>, vector<64x32xbf16>, vector<8x32xf32> -> vector<8x32xf32>
    %c0_48 = arith.constant 0 : index
    %c0_49 = arith.constant 0 : index
    %128 = vector.load %arg12[%c0_48, %c0_49] : memref<1x32xf32, #tpu.memory_space<vmem>>, vector<1x32xf32>
    %129 = vector.broadcast %128 : vector<1x32xf32> to vector<8x32xf32>
    %130 = arith.addf %127, %129 : vector<8x32xf32>
    %131 = arith.addf %116, %130 : vector<8x32xf32>
    %cst_50 = arith.constant dense<0.000000e+00> : vector<8xf32>
    %132 = vector.multi_reduction <add>, %131, %cst_50 [1] : vector<8x32xf32> to vector<8xf32>
    %133 = vector.shape_cast %132 : vector<8xf32> to vector<8x1xf32>
    %cst_51 = arith.constant 3.200000e+01 : f32
    %134 = vector.broadcast %cst_51 : f32 to vector<8x1xf32>
    %135 = arith.divf %133, %134 : vector<8x1xf32>
    %136 = vector.broadcast %135 : vector<8x1xf32> to vector<8x32xf32>
    %137 = arith.subf %131, %136 : vector<8x32xf32>
    %138 = arith.mulf %137, %137 : vector<8x32xf32>
    %cst_52 = arith.constant dense<0.000000e+00> : vector<8xf32>
    %139 = vector.multi_reduction <add>, %138, %cst_52 [1] : vector<8x32xf32> to vector<8xf32>
    %140 = vector.shape_cast %139 : vector<8xf32> to vector<8x1xf32>
    %cst_53 = arith.constant 3.200000e+01 : f32
    %141 = vector.broadcast %cst_53 : f32 to vector<8x1xf32>
    %142 = arith.divf %140, %141 : vector<8x1xf32>
    %143 = vector.broadcast %135 : vector<8x1xf32> to vector<8x32xf32>
    %144 = arith.subf %131, %143 : vector<8x32xf32>
    %cst_54 = arith.constant 9.99999974E-6 : f32
    %145 = vector.broadcast %cst_54 : f32 to vector<8x1xf32>
    %146 = arith.addf %142, %145 : vector<8x1xf32>
    %147 = math.rsqrt %146 : vector<8x1xf32>
    %148 = vector.broadcast %147 : vector<8x1xf32> to vector<8x32xf32>
    %149 = arith.mulf %144, %148 : vector<8x32xf32>
    %c0_55 = arith.constant 0 : index
    %c0_56 = arith.constant 0 : index
    %150 = vector.load %arg13[%c0_55, %c0_56] : memref<1x32xf32, #tpu.memory_space<vmem>>, vector<1x32xf32>
    %151 = vector.broadcast %150 : vector<1x32xf32> to vector<8x32xf32>
    %152 = arith.mulf %149, %151 : vector<8x32xf32>
    %c0_57 = arith.constant 0 : index
    %c0_58 = arith.constant 0 : index
    %153 = vector.load %arg14[%c0_57, %c0_58] : memref<1x32xf32, #tpu.memory_space<vmem>>, vector<1x32xf32>
    %154 = vector.broadcast %153 : vector<1x32xf32> to vector<8x32xf32>
    %155 = arith.addf %152, %154 : vector<8x32xf32>
    %c0_59 = arith.constant 0 : index
    %c0_60 = arith.constant 0 : index
    %c0_61 = arith.constant 0 : index
    %156 = vector.load %arg15[%c0_59, %c0_60, %c0_61] : memref<1x8x32xf32, #tpu.memory_space<vmem>>, vector<1x8x32xf32>
    %157 = vector.shape_cast %156 : vector<1x8x32xf32> to vector<8x32xf32>
    %158 = vector.shape_cast %155 : vector<8x32xf32> to vector<1x8x32xf32>
    tpu.vector_store %arg15[%c0_59, %c0_60, %c0_61], %158 {strides = array<i32>} : memref<1x8x32xf32, #tpu.memory_space<vmem>>, vector<1x8x32xf32>,
    return
  }
  func.func @transform_0(%arg0: i32) -> (i32, i32, i32) {
    %c0_i32 = arith.constant 0 : i32
    %c0_i32_0 = arith.constant 0 : i32
    %c0_i32_1 = arith.constant 0 : i32
    return %arg0, %c0_i32, %c0_i32_0 : i32, i32, i32
  }
  func.func @transform_1(%arg0: i32) -> (i32, i32) {
    %c0_i32 = arith.constant 0 : i32
    %c0_i32_0 = arith.constant 0 : i32
    %c0_i32_1 = arith.constant 0 : i32
    return %c0_i32, %c0_i32_0 : i32, i32
  }
  func.func @transform_2(%arg0: i32) -> (i32, i32) {
    %c0_i32 = arith.constant 0 : i32
    %c0_i32_0 = arith.constant 0 : i32
    %c0_i32_1 = arith.constant 0 : i32
    return %c0_i32, %c0_i32_0 : i32, i32
  }
  func.func @transform_3(%arg0: i32) -> (i32, i32) {
    %c0_i32 = arith.constant 0 : i32
    %c0_i32_0 = arith.constant 0 : i32
    %c0_i32_1 = arith.constant 0 : i32
    return %c0_i32, %c0_i32_0 : i32, i32
  }
  func.func @transform_4(%arg0: i32) -> (i32, i32) {
    %c0_i32 = arith.constant 0 : i32
    %c0_i32_0 = arith.constant 0 : i32
    %c0_i32_1 = arith.constant 0 : i32
    return %c0_i32, %c0_i32_0 : i32, i32
  }
  func.func @transform_5(%arg0: i32) -> (i32, i32) {
    %c0_i32 = arith.constant 0 : i32
    %c0_i32_0 = arith.constant 0 : i32
    %c0_i32_1 = arith.constant 0 : i32
    return %c0_i32, %c0_i32_0 : i32, i32
  }
  func.func @transform_6(%arg0: i32) -> (i32, i32) {
    %c0_i32 = arith.constant 0 : i32
    %c0_i32_0 = arith.constant 0 : i32
    %c0_i32_1 = arith.constant 0 : i32
    return %c0_i32, %c0_i32_0 : i32, i32
  }
  func.func @transform_7(%arg0: i32) -> (i32, i32) {
    %c0_i32 = arith.constant 0 : i32
    %c0_i32_0 = arith.constant 0 : i32
    %c0_i32_1 = arith.constant 0 : i32
    return %c0_i32, %c0_i32_0 : i32, i32
  }
  func.func @transform_8(%arg0: i32) -> (i32, i32) {
    %c0_i32 = arith.constant 0 : i32
    %c0_i32_0 = arith.constant 0 : i32
    %c0_i32_1 = arith.constant 0 : i32
    return %c0_i32, %c0_i32_0 : i32, i32
  }
  func.func @transform_9(%arg0: i32) -> (i32, i32) {
    %c0_i32 = arith.constant 0 : i32
    %c0_i32_0 = arith.constant 0 : i32
    %c0_i32_1 = arith.constant 0 : i32
    return %c0_i32, %c0_i32_0 : i32, i32
  }
  func.func @transform_10(%arg0: i32) -> (i32, i32) {
    %c0_i32 = arith.constant 0 : i32
    %c0_i32_0 = arith.constant 0 : i32
    %c0_i32_1 = arith.constant 0 : i32
    return %c0_i32, %c0_i32_0 : i32, i32
  }
  func.func @transform_11(%arg0: i32) -> (i32, i32) {
    %c0_i32 = arith.constant 0 : i32
    %c0_i32_0 = arith.constant 0 : i32
    %c0_i32_1 = arith.constant 0 : i32
    return %c0_i32, %c0_i32_0 : i32, i32
  }
  func.func @transform_12(%arg0: i32) -> (i32, i32) {
    %c0_i32 = arith.constant 0 : i32
    %c0_i32_0 = arith.constant 0 : i32
    %c0_i32_1 = arith.constant 0 : i32
    return %c0_i32, %c0_i32_0 : i32, i32
  }
  func.func @transform_13(%arg0: i32) -> (i32, i32) {
    %c0_i32 = arith.constant 0 : i32
    %c0_i32_0 = arith.constant 0 : i32
    %c0_i32_1 = arith.constant 0 : i32
    return %c0_i32, %c0_i32_0 : i32, i32
  }
  func.func @transform_14(%arg0: i32) -> (i32, i32, i32) {
    %c0_i32 = arith.constant 0 : i32
    %c0_i32_0 = arith.constant 0 : i32
    %c0_i32_1 = arith.constant 0 : i32
    return %arg0, %c0_i32, %c0_i32_0 : i32, i32, i32
  }
}

</mosaic_0001>

<bundles_post_ra>
// kernel: tpu_custom_call.1
= control target key start
LH: loop header
LB: loop body
LE: loop exit
PB: predicated region body
PF: predicated region fallthrough
CT: control target
= control target key end

     0   :  { %s1701_s0 = inlined_call_operand.vmem [shape: f32[2,8,32], index: 0, kind: input, shape index: {}]   ;;  %s1702_s1 = inlined_call_operand.hbm [shape: f32[8,8], index: 1, kind: input, shape index: {}]   ;;  %s1703_s2 = inlined_call_operand.vmem [shape: bf16[32,96], index: 2, kind: input, shape index: {}]   ;;  %s1704_s3 = inlined_call_operand.vmem [shape: f32[1,96], index: 3, kind: input, shape index: {}]   ;;  %s1705_s4 = inlined_call_operand.vmem [shape: bf16[32,32], index: 4, kind: input, shape index: {}]   ;;  %s1706_s5 = inlined_call_operand.vmem [shape: f32[1,32], index: 5, kind: input, shape index: {}]   ;;  %s1707_s6 = inlined_call_operand.vmem [shape: f32[1,32], index: 6, kind: input, shape index: {}]   ;;  %s1708_s7 = inlined_call_operand.vmem [shape: f32[1,32], index: 7, kind: input, shape index: {}]   ;;  %s1709_s8 = inlined_call_operand.hbm [shape: bf16[32,64], index: 8, kind: input, shape index: {}]   ;;  %s1710_s9 = inlined_call_operand.vmem [shape: f32[1,64], index: 9, kind: input, shape index: {}]   ;;  %s1711_s10 = inlined_call_operand.vmem [shape: bf16[64,32], index: 10, kind: input, shape index: {}]   ;;  %s1712_s11 = inlined_call_operand.vmem [shape: f32[1,32], index: 11, kind: input, shape index: {}]   ;;  %s1713_s12 = inlined_call_operand.vmem [shape: f32[1,32], index: 12, kind: input, shape index: {}]   ;;  %s1714_s13 = inlined_call_operand.vmem [shape: f32[1,32], index: 13, kind: input, shape index: {}]   ;;  %s1715_s14 = inlined_call_operand.hbm [shape: f32[2,8,32], index: 14, kind: output, shape index: {}]  }
   0x1   :  { %1720 = sst [smem:[#allocation15_spill]] %s1701_s0 }
   0x2   :  { %19 = vsyncpa [#allocation3], 0 }
   0x3   :  { %20 = vsyncpa [#allocation6], 0 }
   0x4   :  { %21 = vsyncpa [#allocation4], 0 }
   0x5   :  { %23 = vsyncpa [#allocation4 + $0x1], 0  ;;  %s1495_s29 = smov 0   ;;  %s1497_s30 = smov 0  }
   0x6   :  { %s1499_s15 = smov 0   ;;  %s1501_s16 = smov 0  }
   0x7 LB: > { %1721 = sst [smem:[#allocation11_spill]] %s1395_s15  ;;  %s1516_s17 = sadd.s32 4294967295, %s1399_s16   ;;  %s1399_s16 = sphi %s1501_s16, %s1730_s16   ;;  %s1395_s15 = sphi %s1499_s15, %s1732_s15   ;;  %s1391_s30 = sphi %s1497_s30, %s1734_s30   ;;  %s1387_s29 = sphi %s1495_s29, %s1733_s29  }
   0x8   : > { %s1086_s18 = sadd.s32 4294967294, %s1399_s16   ;;  %s1520_s19 = sadd.s32 1, %s1399_s16  }
   0x9   : > { %1722 = sst [smem:[#allocation12_spill]] %s1520_s19  ;;  %s335_s20 = sadd.s32 1, %s1395_s15 }
   0xa   : > { %s332_s21 = ssub.s32 %s1399_s16, %s1520_s19  ;;  %p345_p0 = scmp.ne.s32.totalorder %s1395_s15, %s1391_s30 }
   0xb   : > { %p333_p1 = scmp.eq.s32.totalorder %s332_s21, 0  ;;  %p346_p2 = scmp.eq.s32.totalorder %s1516_s17, 1 }
   0xc   : > { %p351_p3 = scmp.ne.s32.totalorder %s1391_s30, %s1387_s29  ;;  %p352_p4 = scmp.eq.s32.totalorder %s1086_s18, 1 }
   0xd   : > { %s1531_s22 = scalar_select %p333_p1, %s1395_s15, %s335_s20  }
   0xe   : > { %p1533_p5 = por %p346_p2, %p345_p0  ;;  %p1537_p6 = por %p352_p4, %p351_p3 }
   0xf   : > { %1723 = sst [smem:[#allocation13_spill]] %s1531_s22  ;;  %p1087_p7 = scmp.ge.s32.totalorder %s1399_s16, 1 }
  0x10   : > { %s1725_s24 = scalar_select %p1537_p6, 1, 0 }
  0x11   : > { %p359_p8 = scmp.lt.s32.totalorder %s1399_s16, 3  ;;  %p1183_p9 = scmp.eq.s32.totalorder %s1516_s17, 0 }
  0x12   : > { %1726 = sst [smem:[#allocation14_spill]] %s1725_s24  ;;  %s371_s28 = sshll.u32 %s1702_s1, 4  ;;  %s372_s28 = int_to_ptr.hbm [resolvable:$true] %s371_s28 }
  0x13   : > { %p1544_p10 = pnand %p1087_p7, %p359_p8  ;;  %s1401_s18 = smov [#allocation2]  }
  0x14   : > { %s373_s20 = sshll.u32 %s1401_s18, 4  ;;  %s400_s15 = sshll.u32 %s1709_s8, 4  ;;  %s374_s20 = int_to_ptr.vmem [resolvable:$true] %s373_s20  ;;  %s401_s15 = int_to_ptr.hbm [resolvable:$true] %s400_s15 }
  0x15   : > { %p1172_p11 = pneg %p1544_p10  ;;  %s1402_s19 = smov [#allocation5]  }
  0x16   : > { %s402_s24 = sshll.u32 %s1402_s19, 4  ;;  %s1403_s26 = smov 64   ;;  %s403_s24 = int_to_ptr.vmem [resolvable:$true] %s402_s24 }
  0x17   : > { %p1173_p12 = pnand %p1183_p9, %p1172_p11  ;;  %s1404_s27 = smov 4  }
  0x18   : > { %440 = sbr.rel (%p1544_p10) target bundleno = 1918 (0x77e), region = 76 }
  0x19   : > { %1175 = dma.hbm_to_vmem [thread:$0]  (!%p1173_p12), %s372_s28, 128, %s374_s20, [#allocation3]  }
  0x1a   : > { %1178 = dma.hbm_to_vmem [thread:$0]  (!%p1173_p12), %s401_s15, 256, %s403_s24, [#allocation6], %s1403_s26, %s1403_s26, %s1404_s27  }
  0x1d   : > { %1374 = dma.done.wait (%p1183_p9), [#allocation3], 128  }
  0x1e   : > { %1376 = vsyncadd (%p1183_p9), [#allocation3], 4294967168 }
  0x1f   : > { %1378 = dma.done.wait (%p1183_p9), [#allocation6], 256  }
  0x20   : > { %1380 = vsyncadd (%p1183_p9), [#allocation6], 4294967040  ;;  %p491_p13 = scmp.lt.s32.totalorder %s1516_s17, 1  ;;  %s1728_s0 = sld [smem:[#allocation15_spill]]  ;;  %v1153_v0 = vld [vmem:[%s1703_s2 + $0x8] sm:$0xff]  ;;  %v1152_v1 = vld [vmem:[%s1703_s2] sm:$0xff] }
  0x21   : > { %529 = vmatpush.bf16.msra.mxu0 %v1153_v0  ;;  %vm519_vm0 = vcmask 261120   ;;  %v1239_v4 = vld [vmem:[%s1704_s3] ss:$0 sm:$0xff]  ;;  %s1407_s22 = smov 120   ;;  %s1408_s24 = smov 88   ;;  %vm544_vm1 = vcmask 64512  }
  0x22   : > { %s492_s19 = scalar_select %p491_p13, %s1516_s17, 1  ;;  %v497_v26 = vld [vmem:[#allocation2] sm:$0xff]  ;;  %vm581_vm2 = vcmask 1043456   ;;  %vm782_vm3 = vcmask 130048   ;;  %vm784_vm4 = vcmask 195584   ;;  %vm938_vm9 = vcmask 523264  }
  0x23   : > { %s1410_s28 = smov 72   ;;  %s1411_s18 = smov 112  }
  0x24   : > { %s1095_s15 = sshll.u32 %s492_s19, 3  ;;  %s1405_s19 = smov 96  }
  0x25   : > { %530 = vmatpush.bf16.msra.mxu0 %v1152_v1  ;;  %s1412_s20 = smov 64   ;;  %s1413_s21 = smov 40  }
  0x26   : > { %s494_s25 = scalar_lea.vmem %s1728_s0, %s1095_s15  ;;  %s1406_s15 = smov 104  }
  0x27   : > { %v1579_v2 = vld [vmem:[%s494_s25] sm:$0xff]  ;;  %s1409_s25 = smov 80   ;;  %s1414_s26 = smov 56  }
  0x28   : > { %v498_v3 = vpack.c.bf16 %v1579_v2, %v1579_v2  ;;  %s1415_s27 = smov 48  }
  0x2a   : > { %1104 = vmatmul.msk.bf16.vlgmr.msra.gmra.mxu0 %vm519_vm0, %v498_v3 }
  0xa7   : > { %v532_v5 = vpop.f32.mrf.mxu0 }
  0xa8   : > { %v533_v6 = vadd.f32 %v1239_v4, %v532_v5 }
  0xaa   : > { %v536_v7 = vmul.f32 0.35355338, %v533_v6  ;;  %v538_v8 = vpack.c.bf16 %v533_v6, %v533_v6 }
  0xac   : > { %v537_v9 = vpack.c.bf16 %v536_v7, %v536_v7  ;;  %v540_v10 = vunpack.c.l.b16 %v538_v8 }
  0xae   : > { %v1587_v11 = vpack.c.b16 %v540_v10, %v540_v10  ;;  %v599_v12 = vunpack.c.l.b16 %v537_v9 }
  0xaf   : > { %v534_v13 = vpop.f32.mrf.mxu0 }
  0xb0   : > { %542 = vrot.lane.b32.xlu0 %v1587_v11, %s1405_s19  ;;  %v600_v14 = vpack.c.b16 %v599_v12, %v599_v12  ;;  %s1416_s19 = smov 8  }
  0xb2   : > { %713 = vrot.lane.b32.xlu2 %v600_v14, %s1406_s15  ;;  %601 = vrot.lane.b32.xlu1 %v600_v14, %s1407_s22  ;;  %s1417_s15 = smov 16   ;;  %s1418_s22 = smov 24  }
  0xb8   : > { %603 = vrot.lane.b32.xlu0 %v1587_v11, %s1408_s24  ;;  %s488_s24 = sand.u32 1, %s1391_s30  }
  0xba   : > { %659 = vrot.lane.b32.xlu2 %v1587_v11, %s1409_s25  ;;  %715 = vrot.lane.b32.xlu1 %v1587_v11, %s1410_s28  ;;  %s1094_s25 = sshll.u32 %s488_s24, 3  ;;  %s1149_s28 = sshll.u32 %s1516_s17, 3 }
  0xc0   : > { %657 = vrot.lane.b32.xlu0 %v600_v14, %s1411_s18  ;;  %s990_s18 = scalar_lea.sflag [#allocation4], %s488_s24 }
 0x10c   : > { %v714_v15 = vpop.permute.xlu2 %713 }
 0x114   : > { %v660_v16 = vpop.permute.xlu2 %659 }
 0x115   : > { %v665_v17 = vsel %vm544_vm1, %v660_v16, 0 }
 0x116   : > { %674 = vmatpush.bf16.xpose.msrb.mxu0 %v665_v17 }
 0x122   : > { %v543_v18 = vpop.permute.xlu0 %542 }
 0x123   : > { %v549_v19 = vsel %vm544_vm1, %v543_v18, 0 }
 0x124   : > { %558 = vmatpush.bf16.xpose.msra.mxu1 %v549_v19  ;;  %v602_v20 = vpop.permute.xlu1 %601 }
 0x12a   : > { %v604_v21 = vpop.permute.xlu0 %603 }
 0x12b   : > { %1105 = vmatmul.msk.bf16.vlgmr.msra.gmra.mxu1 %vm544_vm1, %v537_v9  ;;  %v609_v22 = vsel %vm544_vm1, %v604_v21, 0 }
 0x12c   : > { %618 = vmatpush.bf16.xpose.msra.mxu3 %v609_v22  ;;  %v716_v23 = vpop.permute.xlu1 %715 }
 0x12d   : > { %v721_v24 = vsel %vm544_vm1, %v716_v23, 0 }
 0x132   : > { %v658_v25 = vpop.permute.xlu0 %657 }
 0x133   : > { %1107 = vmatmul.msk.bf16.vlgmr.msra.gmra.mxu3 %vm544_vm1, %v602_v20  ;;  %1109 = vmatmul.msk.bf16.vlgmr.msrb.gmra.mxu0 %vm544_vm1, %v658_v25 }
 0x134   : > { %730 = vmatpush.bf16.xpose.msrb.mxu3 %v721_v24 }
 0x143   : > { %1111 = vmatmul.msk.bf16.vlgmr.msrb.gmra.mxu3 %vm544_vm1, %v714_v15 }
 0x1a8   : > { %v560_v27 = vpop.f32.mrf.mxu1 }
 0x1a9   : > { %v561_v28 = vadd.f32 %v560_v27, %v497_v26 }
 0x1ab   : > { %v564_v29 = vsel %vm544_vm1, %v561_v28, -inf }
 0x1ac   : > { %565 = vmax.xlane.f32.xlu1 %v564_v29 }
 0x1b0   : > { %v562_v30 = vpop.f32.mrf.mxu1  ;;  %v676_v31 = vpop.f32.mrf.mxu0 }
 0x1b1   : > { %v677_v36 = vadd.f32 %v676_v31, %v497_v26 }
 0x1b3   : > { %v680_v38 = vsel %vm544_vm1, %v677_v36, -inf }
 0x1b6   : > { %v620_v32 = vpop.f32.mrf.mxu3 }
 0x1b7   : > { %v621_v33 = vadd.f32 %v620_v32, %v497_v26  ;;  %v1155_v32 = vld [vmem:[%s1705_s4 + $0x8] sm:$0xff] }
 0x1b8   : > { %v678_v34 = vpop.f32.mrf.mxu0  ;;  %816 = vmatpush.bf16.msra.mxu0 %v1155_v32 }
 0x1b9   : > { %v624_v35 = vsel %vm544_vm1, %v621_v33, -inf }
 0x1ba   : > { %625 = vmax.xlane.f32.xlu2 %v624_v35 }
 0x1be   : > { %v622_v37 = vpop.f32.mrf.mxu3 }
 0x1c2   : > { %681 = vmax.xlane.f32.xlu2 %v680_v38 }
 0x1c6   : > { %v732_v39 = vpop.f32.mrf.mxu3 }
 0x1c7   : > { %v733_v40 = vadd.f32 %v732_v39, %v497_v26 }
 0x1c9   : > { %v736_v41 = vsel %vm544_vm1, %v733_v40, -inf }
 0x1ca   : > { %737 = vmax.xlane.f32.xlu0 %v736_v41  ;;  %v1240_v41 = vld [vmem:[%s1706_s5] ss:$0 sm:$0xff] }
 0x1ce   : > { %v734_v42 = vpop.f32.mrf.mxu3 }
 0x1da   : > { %576 = vrot.lane.b32.xlu2 %v1587_v11, %s1412_s20 }
 0x1e2   : > { %748 = vrot.lane.b32.xlu2 %v1587_v11, %s1413_s21 }
 0x21f   : > { %v566_v43 = vpop.xlane.xlu1 %565 }
 0x220   : > { %v567_v44 = vsub.f32 %v561_v28, %v566_v43 }
 0x222   : > { %v568_v45 = vmul.f32 1.442695, %v567_v44 }
 0x224   : > { %1247 = vpow2.f32 %v568_v45 }
 0x22a   : > { %v1248_v46 = vpop.eup %1247 }
 0x22b   : > { %v570_v47 = vsel %vm544_vm1, %v1248_v46, 0.0 }
 0x22c   : > { %571 = vadd.xlane.f32.xlu1 %v570_v47  ;;  %v1419_v47 = vmov 32.0  }
 0x22d   : > { %v626_v48 = vpop.xlane.xlu2 %625 }
 0x22e   : > { %v627_v51 = vsub.f32 %v621_v33, %v626_v48  ;;  %v1154_v33 = vld [vmem:[%s1705_s4] sm:$0xff] }
 0x22f   : > { %817 = vmatpush.bf16.msra.mxu0 %v1154_v33 }
 0x230   : > { %v628_v53 = vmul.f32 1.442695, %v627_v51 }
 0x235   : > { %v682_v49 = vpop.xlane.xlu2 %681 }
 0x236   : > { %v683_v50 = vsub.f32 %v677_v36, %v682_v49 }
 0x238   : > { %v684_v52 = vmul.f32 1.442695, %v683_v50 }
 0x23a   : > { %1249 = vpow2.f32 %v684_v52 }
 0x23b   : > { %1251 = vpow2.f32 %v628_v53 }
 0x23d   : > { %v577_v54 = vpop.permute.xlu2 %576  ;;  %v738_v55 = vpop.xlane.xlu0 %737 }
 0x23e   : > { %v583_v56 = vsel %vm581_vm2, %v577_v54, 0  ;;  %v739_v58 = vsub.f32 %v733_v40, %v738_v55 }
 0x23f   : > { %592 = vmatpush.bf16.msra.mxu2 %v583_v56 }
 0x240   : > { %v1250_v57 = vpop.eup %1249  ;;  %v740_v60 = vmul.f32 1.442695, %v739_v58 }
 0x241   : > { %v686_v59 = vsel %vm544_vm1, %v1250_v57, 0.0  ;;  %v1252_v61 = vpop.eup %1251 }
 0x242   : > { %687 = vadd.xlane.f32.xlu0 %v686_v59  ;;  %1253 = vpow2.f32 %v740_v60  ;;  %v630_v62 = vsel %vm544_vm1, %v1252_v61, 0.0  ;;  %v1156_v59 = vld [vmem:[#allocation5] sm:$0xff]  ;;  %v1161_v60 = vld [vmem:[%s1711_s10 + $0x18] sm:$0xff] }
 0x243   : > { %946 = vmatpush.bf16.msra.mxu3 %v1161_v60 }
 0x245   : > { %636 = vrot.lane.b32.xlu1 %v1587_v11, %s1414_s26  ;;  %v749_v7 = vpop.permute.xlu2 %748 }
 0x246   : > { %v754_v10 = vsel %vm581_vm2, %v749_v7, 0 }
 0x248   : > { %v1254_v63 = vpop.eup %1253 }
 0x249   : > { %v742_v0 = vsel %vm544_vm1, %v1254_v63, 0.0 }
 0x24a   : > { %631 = vadd.xlane.f32.xlu0 %v630_v62 }
 0x252   : > { %743 = vadd.xlane.f32.xlu0 %v742_v0 }
 0x266   : > { %692 = vrot.lane.b32.xlu0 %v1587_v11, %s1415_s27  ;;  %s1000_s27 = scalar_lea.hbm %s1715_s14, %s1149_s28 }
 0x267   : > { %s1004_s0 = sshll.u32 %s1000_s27, 4  ;;  %s1005_s0 = int_to_ptr.hbm [resolvable:$true] %s1004_s0 }
 0x268   : > { %s1343_s20 = sshra.s32 %s1005_s0, 4  ;;  %s1344_s20 = int_to_ptr.hbm [resolvable:$true] %s1343_s20 }
 0x269   : > { %s1345_s28 = scalar_lea.hbm %s1344_s20, 8  ;;  %p1350_p3 = scmp.lt.s32.totalorder %s1344_s20, %s1715_s14 }
 0x26a   : > { %p1346_p0 = scmp.ne.s32.totalorder %s1344_s20, %s1345_s28 }
 0x26c   : > { %p1347_p1 = pnand %p1346_p0, %p1533_p5 }
 0x26e   : > { %p1348_p2 = pneg %p1347_p1 }
 0x29f   : > { %v572_v1 = vpop.xlane.xlu1 %571 }
 0x2a0   : > { %1255 = vrcp.f32 %v572_v1  ;;  %v1159_v1 = vld [vmem:[%s1711_s10 + $0x8] sm:$0xff] }
 0x2a6   : > { %v1256_v3 = vpop.eup %1255 }
 0x2a7   : > { %v574_v4 = vmul.f32 %v1256_v3, %v1248_v46 }
 0x2a9   : > { %v575_v5 = vpack.c.bf16 %v574_v4, %v574_v4 }
 0x2ab   : > { %1106 = vmatmul.msk.bf16.vlgmr.msra.gmra.mxu2 %vm544_vm1, %v575_v5 }
 0x2b5   : > { %v688_v6 = vpop.xlane.xlu0 %687 }
 0x2b7   : > { %v637_v8 = vpop.permute.xlu1 %636 }
 0x2b8   : > { %v642_v9 = vsel %vm581_vm2, %v637_v8, 0 }
 0x2b9   : > { %651 = vmatpush.bf16.msrb.mxu2 %v642_v9  ;;  %v1241_v9 = vld [vmem:[%s1707_s6] ss:$0 sm:$0xff] }
 0x2bd   : > { %763 = vmatpush.bf16.msra.mxu2 %v754_v10  ;;  %v632_v12 = vpop.xlane.xlu0 %631 }
 0x2be   : > { %1257 = vrcp.f32 %v632_v12  ;;  %v1242_v12 = vld [vmem:[%s1708_s7] ss:$0 sm:$0xff] }
 0x2c4   : > { %v1258_v13 = vpop.eup %1257 }
 0x2c5   : > { %v634_v11 = vmul.f32 %v1258_v13, %v1252_v61  ;;  %v744_v14 = vpop.xlane.xlu0 %743 }
 0x2c6   : > { %1259 = vrcp.f32 %v744_v14 }
 0x2c7   : > { %v635_v15 = vpack.c.bf16 %v634_v11, %v634_v11  ;;  %1261 = vrcp.f32 %v688_v6 }
 0x2c8   : > { %1263 = vrcp.f32 %v1419_v47 }
 0x2c9   : > { %1108 = vmatmul.msk.bf16.vlgmr.msrb.gmra.mxu2 %vm544_vm1, %v635_v15 }
 0x2cc   : > { %v1260_v16 = vpop.eup %1259 }
 0x2cd   : > { %v746_v17 = vmul.f32 %v1260_v16, %v1254_v63  ;;  %v1262_v18 = vpop.eup %1261  ;;  %v1160_v63 = vld [vmem:[%s1711_s10 + $0x10] sm:$0xff]  ;;  %v1158_v16 = vld [vmem:[%s1711_s10] sm:$0xff] }
 0x2ce   : > { %v690_v19 = vmul.f32 %v1262_v18, %v1250_v57  ;;  %v1264_v48 = vpop.eup %1263  ;;  %947 = vmatpush.bf16.msra.mxu3 %v1160_v63 }
 0x2cf   : > { %v747_v20 = vpack.c.bf16 %v746_v17, %v746_v17  ;;  %v828_v49 = vmul.f32 32.0, %v1264_v48  ;;  %vm832_vm5 = vweird.f32 %v1264_v48  ;;  %v1243_v17 = vld [vmem:[%s1710_s9] ss:$0 sm:$0xff] }
 0x2d0   : > { %v691_v23 = vpack.c.bf16 %v690_v19, %v690_v19 }
 0x2d1   : > { %v829_v50 = vsub.f32 1.0, %v828_v49 }
 0x2d2   : > { %948 = vmatpush.bf16.msra.mxu3 %v1159_v1 }
 0x2d3   : > { %v830_v51 = vmul.f32 %v1264_v48, %v829_v50 }
 0x2d5   : > { %v831_v52 = vadd.f32 %v1264_v48, %v830_v51 }
 0x2d6   : > { %949 = vmatpush.bf16.msra.mxu3 %v1158_v16 }
 0x2d7   : > { %v833_v53 = vsel %vm832_vm5, %v1264_v48, %v831_v52 }
 0x2d8   : > { %v693_v21 = vpop.permute.xlu0 %692 }
 0x2d9   : > { %1112 = vmatmul.msk.bf16.vlgmr.msra.gmra.mxu2 %vm544_vm1, %v747_v20  ;;  %v698_v22 = vsel %vm581_vm2, %v693_v21, 0 }
 0x2da   : > { %707 = vmatpush.bf16.msrb.mxu1 %v698_v22 }
 0x2dd   : > { %1110 = vmatmul.msk.bf16.vlgmr.msrb.gmra.mxu1 %vm544_vm1, %v691_v23  ;;  %v1244_v23 = vld [vmem:[%s1712_s11] ss:$0 sm:$0xff] }
 0x32e   : > { %v594_v24 = vpop.f32.mrf.mxu2 }
 0x336   : > { %v596_v25 = vpop.f32.mrf.mxu2 }
 0x34c   : > { %v653_v26 = vpop.f32.mrf.mxu2 }
 0x34d   : > { %770 = vrot.lane.b32.xlu1 %v653_v26, %s1416_s19 }
 0x354   : > { %v655_v27 = vpop.f32.mrf.mxu2 }
 0x35a   : > { %v709_v28 = vpop.f32.mrf.mxu1 }
 0x35b   : > { %774 = vrot.lane.b32.xlu2 %v709_v28, %s1417_s15 }
 0x35c   : > { %v765_v29 = vpop.f32.mrf.mxu2 }
 0x35d   : > { %778 = vrot.lane.b32.xlu1 %v765_v29, %s1418_s22  ;;  %s490_s22 = scalar_lea.vmem [#allocation7], %s1094_s25  ;;  %s1349_s25 = scalar_lea.hbm %s1715_s14, 16 }
 0x35e   : > { %s1002_s17 = sshll.u32 %s490_s22, 4  ;;  %p1351_p4 = scmp.lt.s32.totalorder %s1349_s25, %s1345_s28  ;;  %s1003_s17 = int_to_ptr.vmem [resolvable:$true] %s1002_s17 }
 0x360   : > { %p1352_p7 = por %p1351_p4, %p1350_p3 }
 0x362   : > { %v711_v30 = vpop.f32.mrf.mxu1  ;;  %p1353_p8 = pnand %p1352_p7, %p1348_p2 }
 0x364   : > { %v767_v31 = vpop.f32.mrf.mxu2 }
 0x3b5   : > { %v775_v36 = vpop.permute.xlu2 %774 }
 0x3bf   : > { %v771_v34 = vpop.permute.xlu1 %770 }
 0x3c0   : > { %v781_v35 = vsel %vm544_vm1, %v594_v24, %v771_v34 }
 0x3c1   : > { %v783_v37 = vsel %vm782_vm3, %v781_v35, %v775_v36 }
 0x3cf   : > { %v779_v38 = vpop.permute.xlu1 %778 }
 0x3d0   : > { %v785_v39 = vsel %vm784_vm4, %v783_v37, %v779_v38 }
 0x3d1   : > { %v786_v40 = vpack.c.bf16 %v785_v39, %v785_v39 }
 0x3d3   : > { %1121 = vmatmul.msk.bf16.vlgmr.msra.gmra.mxu0 %vm519_vm0, %v786_v40 }
 0x450   : > { %v819_v42 = vpop.f32.mrf.mxu0 }
 0x451   : > { %v820_v43 = vadd.f32 %v1240_v41, %v819_v42 }
 0x453   : > { %v823_v44 = vadd.f32 %v820_v43, %v1579_v2  ;;  %v1157_v2 = vld [vmem:[#allocation5 + $0x8] sm:$0xff]  ;;  %v1245_v43 = vld [vmem:[%s1713_s12] ss:$0 sm:$0xff] }
 0x454   : > { %893 = vmatpush.bf16.msra.mxu1 %v1157_v2 }
 0x455   : > { %v824_v45 = vsel %vm519_vm0, %v823_v44, 0.0 }
 0x456   : > { %825 = vadd.xlane.f32.xlu2 %v824_v45 }
 0x458   : > { %v821_v46 = vpop.f32.mrf.mxu0  ;;  %894 = vmatpush.bf16.msra.mxu1 %v1156_v59 }
 0x459   : > { %v1246_v46 = vld [vmem:[%s1714_s13] ss:$0 sm:$0xff] }
 0x4c9   : > { %v826_v54 = vpop.xlane.xlu2 %825 }
 0x4ca   : > { %v834_v55 = vmul.f32 %v833_v53, %v826_v54 }
 0x4cc   : > { %v835_v56 = vsub.f32 %v823_v44, %v834_v55 }
 0x4ce   : > { %v836_v57 = vmul.f32 %v835_v56, %v835_v56 }
 0x4d0   : > { %v837_v58 = vsel %vm519_vm0, %v836_v57, 0.0 }
 0x4d1   : > { %838 = vadd.xlane.f32.xlu1 %v837_v58 }
 0x544   : > { %v839_v61 = vpop.xlane.xlu1 %838 }
 0x545   : > { %v840_v62 = vmul.f32 %v839_v61, %v833_v53 }
 0x547   : > { %v841_v0 = vadd.f32 1e-05, %v840_v62 }
 0x549   : > { %1265 = vrsqrt.f32 %v841_v0  ;;  %vm848_vm7 = vweird.f32 %v841_v0 }
 0x54f   : > { %v1266_v3 = vpop.eup %1265 }
 0x550   : > { %v843_v4 = vmul.f32 %v1266_v3, %v841_v0  ;;  %vm849_vm6 = vweird.f32 %v1266_v3 }
 0x551   : > { %vm850_vm8 = vmor %vm848_vm7, %vm849_vm6 }
 0x552   : > { %v844_v5 = vmul.f32 %v1266_v3, %v843_v4 }
 0x554   : > { %v845_v6 = vmul.f32 0.5, %v844_v5 }
 0x556   : > { %v846_v7 = vsub.f32 1.5, %v845_v6 }
 0x558   : > { %v847_v8 = vmul.f32 %v1266_v3, %v846_v7 }
 0x55a   : > { %v851_v10 = vsel %vm850_vm8, %v1266_v3, %v847_v8 }
 0x55b   : > { %v852_v13 = vmul.f32 %v851_v10, %v835_v56 }
 0x55d   : > { %v857_v11 = vmul.f32 %v1241_v9, %v852_v13 }
 0x55f   : > { %v862_v14 = vadd.f32 %v1242_v12, %v857_v11 }
 0x561   : > { %v863_v15 = vpack.c.bf16 %v862_v14, %v862_v14 }
 0x563   : > { %1130 = vmatmul.msk.bf16.vlgmr.msra.gmra.mxu1 %vm519_vm0, %v863_v15 }
 0x5e0   : > { %v896_v18 = vpop.f32.mrf.mxu1 }
 0x5e1   : > { %v897_v19 = vadd.f32 %v1243_v17, %v896_v18 }
 0x5e3   : > { %v900_v20 = vmax.f32 %v897_v19, 0.0 }
 0x5e5   : > { %v901_v21 = vpack.c.bf16 %v900_v20, %v900_v20 }
 0x5e7   : > { %1147 = vmatmul.msk.bf16.vlgmr.msra.gmra.mxu3 %vm938_vm9, %v901_v21 }
 0x5e8   : > { %v898_v22 = vpop.f32.mrf.mxu1 }
 0x66a   : > { %v951_v24 = vpop.f32.mrf.mxu3 }
 0x66b   : > { %v952_v25 = vadd.f32 %v1244_v23, %v951_v24 }
 0x66d   : > { %v955_v26 = vadd.f32 %v952_v25, %v862_v14 }
 0x66f   : > { %v956_v27 = vsel %vm519_vm0, %v955_v26, 0.0 }
 0x670   : > { %957 = vadd.xlane.f32.xlu0 %v956_v27 }
 0x672   : > { %v953_v28 = vpop.f32.mrf.mxu3 }
 0x6e3   : > { %v958_v29 = vpop.xlane.xlu0 %957 }
 0x6e4   : > { %v959_v30 = vmul.f32 %v958_v29, %v833_v53 }
 0x6e6   : > { %v960_v31 = vsub.f32 %v955_v26, %v959_v30 }
 0x6e8   : > { %v961_v32 = vmul.f32 %v960_v31, %v960_v31 }
 0x6ea   : > { %v962_v33 = vsel %vm519_vm0, %v961_v32, 0.0 }
 0x6eb   : > { %963 = vadd.xlane.f32.xlu2 %v962_v33 }
 0x75e   : > { %v964_v34 = vpop.xlane.xlu2 %963 }
 0x75f   : > { %v965_v35 = vmul.f32 %v964_v34, %v833_v53 }
 0x761   : > { %v966_v36 = vadd.f32 1e-05, %v965_v35 }
 0x763   : > { %1267 = vrsqrt.f32 %v966_v36  ;;  %vm973_vm11 = vweird.f32 %v966_v36 }
 0x769   : > { %v1268_v37 = vpop.eup %1267 }
 0x76a   : > { %v968_v38 = vmul.f32 %v1268_v37, %v966_v36  ;;  %vm974_vm10 = vweird.f32 %v1268_v37 }
 0x76b   : > { %vm975_vm12 = vmor %vm973_vm11, %vm974_vm10 }
 0x76c   : > { %v969_v39 = vmul.f32 %v1268_v37, %v968_v38 }
 0x76e   : > { %v970_v40 = vmul.f32 0.5, %v969_v39 }
 0x770   : > { %v971_v41 = vsub.f32 1.5, %v970_v40 }
 0x772   : > { %v972_v42 = vmul.f32 %v1268_v37, %v971_v41 }
 0x774   : > { %v976_v44 = vsel %vm975_vm12, %v1268_v37, %v972_v42 }
 0x775   : > { %v977_v45 = vmul.f32 %v976_v44, %v960_v31 }
 0x777   : > { %v982_v47 = vmul.f32 %v1245_v43, %v977_v45 }
 0x779   : > { %v987_v48 = vadd.f32 %v1246_v46, %v982_v47 }
 0x77b   : > { %988 = vst.msk [vmem:[%s490_s22] sm:$0xff] %vm519_vm0, %v987_v48 }
 0x77c   : > { %1356 = shalt.err (!%p1353_p8)
}
 0x77d   : > { %1170 = dma.vmem_to_hbm [thread:$0]  (%p1533_p5), %s1003_s17, 128, %s1005_s0, %s990_s18  }
 0x77e PF: > { %p1187_p9 = scmp.ge.s32.totalorder %s1399_s16, 2  ;;  %s1016_s15 = sand.u32 1, %s1387_s29  }
 0x77f   : > { %s1017_s22 = scalar_lea.sflag [#allocation4], %s1016_s15 }
 0x780   : > { %p1180_p10 = pnand %p1187_p9, %p1537_p6 }
 0x782   : > { %p1181_p11 = pneg %p1180_p10 }
 0x784   : > { %1382 = dma.done.wait (%p1181_p11), %s1017_s22, 128  }
 0x785   : > { %1384 = vsyncadd (%p1181_p11), %s1017_s22, 4294967168  ;;  %s1730_s16 = sld [smem:[#allocation12_spill]]  ;;  %s1733_s29 = smov %s1391_s30 }
 0x786   : > { %s1731_s20 = sld [smem:[#allocation11_spill]] }
 0x787   : > { %s1732_s15 = sld [smem:[#allocation13_spill]] }
 0x78b   : > { %p26_p12 = scmp.ge.s32.totalorder %s1730_s16, 4  }
 0x78c   : > { %s1734_s30 = smov %s1731_s20 }
 0x78d   :  { %28 = sbr.rel (!%p26_p12) target bundleno = 7 (0x7), region = 120 }
 0x792   :  { %1023 = vsyncpa [#allocation3], 1 }
 0x793   :  { %1025 = vsyncpa [#allocation3 + $0x1], 1 }
 0x794   :  { %1026 = vsyncpa [#allocation6], 1 }
 0x795   :  { %1027 = vsyncpa [#allocation4], 1 }
 0x796   :  { %1029 = vsyncpa [#allocation4 + $0x1], 1 }

</bundles_post_ra>
